<compile_context>
chip_gen: v7x
topology: tpu7x:2x2x1
jax: 0.10.0
libtpu: 0.0.40
codegen_flags: <defaults>
</compile_context>

<pallas_src>
import jax
import jax.numpy as jnp
from jax.experimental import pallas as pl
from jax.experimental.pallas import tpu as pltpu

SELU_ALPHA = 1.6732632423543772
SELU_SCALE = 1.0507009873554805


def _selu(x):
    # exp only of the non-positive branch to avoid inf in the discarded side.
    return SELU_SCALE * jnp.where(
        x > 0, x, SELU_ALPHA * (jnp.exp(jnp.minimum(x, 0.0)) - 1.0))


def _round_up(n, m):
    return -(-n // m) * m


# ----------------------------------------------------------------------------
# Kernel: three MXU matmuls (bf16 operands, f32 accumulation) per batch tile.
# Weights/biases are VMEM-resident across the batch grid (constant index_maps).
# ----------------------------------------------------------------------------
def _bindspace_kernel(x_ref, w1_ref, b1_ref, wf1_ref, bf1_ref, wf2_ref, bf2_ref,
                      out_ref):
    # shared trunk: (tb, D) @ (D, H1_pad) + b1 -> SELU
    x = x_ref[...].astype(jnp.bfloat16)
    h = _selu(jnp.dot(x, w1_ref[...],
                      preferred_element_type=jnp.float32) + b1_ref[...])
    # all 19 fingers' hidden layers fused: (tb, H1_pad) @ (H1_pad, NFH2_pad)
    z = _selu(jnp.dot(h.astype(jnp.bfloat16), wf1_ref[...],
                      preferred_element_type=jnp.float32) + bf1_ref[...])
    # TODO(synk): nn.Dropout(p=0.2) is identity at inference; no training mask.
    # all 19 fingers' output layers as one block-diagonal matmul:
    # (tb, NFH2_pad) @ (NFH2_pad, NF_pad) + bf2 -> lane-dense (tb, NF_pad)
    y = jnp.dot(z.astype(jnp.bfloat16), wf2_ref[...],
                preferred_element_type=jnp.float32) + bf2_ref[...]
    out_ref[...] = y.astype(out_ref.dtype)


def bindspace_forward(x, w1_p, b1_p, wf1_p, bf1_p, wf2_p, bf2_p, n_f,
                      tile_b=None):
    """x: (B, D_in) float32.  Returns stacked (B, n_f) finger outputs.

    Callers wanting the PyTorch list-of-(B,1) view should slice lazily outside
    the kernel (see split_fingers); no per-finger slicing is done here.
    """
    B, D = x.shape
    H1_pad = w1_p.shape[1]
    NFH2_pad = wf1_p.shape[1]
    NF_pad = wf2_p.shape[1]

    # Batch tile: large enough to amortize the 9 MXU weight-tile pushes per
    # grid step; 8-aligned for the f32 x / f32 out tiles.
    if tile_b is None:
        tile_b = min(512, _round_up(B, 8))
    tile_b = _round_up(tile_b, 8)

    # Only pad a ragged batch tail (no feature-dim padding of x at all).
    B_pad = _round_up(B, tile_b)
    if B_pad != B:
        x = jnp.pad(x, ((0, B_pad - B), (0, 0)))
    grid = (B_pad // tile_b,)

    flops = 2 * B_pad * (D * H1_pad + H1_pad * NFH2_pad + NFH2_pad * NF_pad)
    bytes_accessed = (
        B_pad * D * x.dtype.itemsize            # x streamed in
        + B_pad * NF_pad * 4                    # out streamed back
        + sum(int(a.size) * a.dtype.itemsize    # weights/biases: loaded once
              for a in (w1_p, b1_p, wf1_p, bf1_p, wf2_p, bf2_p)))

    out = pl.pallas_call(
        _bindspace_kernel,
        out_shape=jax.ShapeDtypeStruct((B_pad, NF_pad), jnp.float32),
        grid=grid,
        in_specs=[
            # x streams per batch tile (full 300-wide minor dim => exempt from
            # the 128-divisibility rule, no padded copy of x needed).
            pl.BlockSpec((tile_b, D), lambda i: (i, 0)),
            # weights/biases: constant index_map => DMA'd once, VMEM-resident.
            pl.BlockSpec((D, H1_pad), lambda i: (0, 0)),
            pl.BlockSpec((1, H1_pad), lambda i: (0, 0)),
            pl.BlockSpec((H1_pad, NFH2_pad), lambda i: (0, 0)),
            pl.BlockSpec((1, NFH2_pad), lambda i: (0, 0)),
            pl.BlockSpec((NFH2_pad, NF_pad), lambda i: (0, 0)),
            pl.BlockSpec((1, NF_pad), lambda i: (0, 0)),
        ],
        out_specs=pl.BlockSpec((tile_b, NF_pad), lambda i: (i, 0)),
        compiler_params=pltpu.CompilerParams(
            dimension_semantics=("parallel",)),
        cost_estimate=pl.CostEstimate(
            flops=flops,
            transcendentals=B_pad * (H1_pad + NFH2_pad),
            bytes_accessed=bytes_accessed),
    )(x, w1_p, b1_p, wf1_p, bf1_p, wf2_p, bf2_p)
    return out[:B, :n_f]


def split_fingers(stacked):
    """Optional: reproduce the PyTorch list-of-(B,1) output format (host side)."""
    return [stacked[:, f:f + 1] for f in range(stacked.shape[1])]


# ----------------------------------------------------------------------------
# Glue: weight_norm resolution + fusion + padding + bf16 cast (all offline)
# ----------------------------------------------------------------------------
def _weight_norm(v, g):
    """PyTorch nn.utils.weight_norm with dim=0: per-output-row normalization."""
    norm = jnp.sqrt(jnp.sum(v * v, axis=-1, keepdims=True))
    return g * v / norm


def make_params(key, d_in=300, h1=100, h2=20, n_f=19):
    """Returns (reference_params, kernel_params)."""
    ks = jax.random.split(key, 9)

    # fc1 (weight_norm): v (h1, d_in), g (h1, 1), bias (h1,)
    v1 = jax.random.normal(ks[0], (h1, d_in), jnp.float32) * 0.05
    g1 = 1.0 + 0.1 * jax.random.normal(ks[1], (h1, 1), jnp.float32)
    b1 = jax.random.normal(ks[2], (h1,), jnp.float32) * 0.05
    w1_eff = _weight_norm(v1, g1).T                   # (d_in, h1)
    b1_row = b1.reshape(1, h1)

    # finger layer 1 (weight_norm): v (n_f, h2, h1), g (n_f, h2, 1), bias (n_f, h2)
    vf1 = jax.random.normal(ks[3], (n_f, h2, h1), jnp.float32) * 0.1
    gf1 = 1.0 + 0.1 * jax.random.normal(ks[4], (n_f, h2, 1), jnp.float32)
    bf1 = jax.random.normal(ks[5], (n_f, h2), jnp.float32) * 0.05
    wf1_eff = _weight_norm(vf1, gf1)                  # (n_f, h2, h1)
    wf1_t = jnp.transpose(wf1_eff, (0, 2, 1))         # (n_f, h1, h2)
    bf1_rows = bf1.reshape(n_f, 1, h2)

    # finger layer 2 (weight_norm): v (n_f, 1, h2), g (n_f, 1, 1), bias (n_f, 1)
    vf2 = jax.random.normal(ks[6], (n_f, 1, h2), jnp.float32) * 0.1
    gf2 = 1.0 + 0.1 * jax.random.normal(ks[7], (n_f, 1, 1), jnp.float32)
    bf2 = jax.random.normal(ks[8], (n_f, 1), jnp.float32) * 0.05
    wf2_eff = _weight_norm(vf2, gf2)                  # (n_f, 1, h2)

    reference_params = (w1_eff, b1_row, wf1_t, bf1_rows, wf2_eff, bf2)

    # ---- kernel-side fusion + padding + bf16 cast (paid once, offline) ----
    H1_pad = _round_up(h1, 128)           # 100 -> 128
    NFH2 = n_f * h2                       # 380
    NFH2_pad = _round_up(NFH2, 128)       # 380 -> 384
    NF_pad = _round_up(n_f, 128)          # 19  -> 128

    # trunk weights: (d_in, H1_pad) bf16, (1, H1_pad) f32 bias
    w1_p = (jnp.zeros((d_in, H1_pad), jnp.float32)
            .at[:, :h1].set(w1_eff)).astype(jnp.bfloat16)
    b1_p = jnp.zeros((1, H1_pad), jnp.float32).at[:, :h1].set(b1_row)

    # fused finger hidden layer: concat along output dim -> (H1_pad, NFH2_pad)
    wf1_cat = jnp.transpose(wf1_t, (1, 0, 2)).reshape(h1, NFH2)   # (h1, n_f*h2)
    wf1_p = (jnp.zeros((H1_pad, NFH2_pad), jnp.float32)
             .at[:h1, :NFH2].set(wf1_cat)).astype(jnp.bfloat16)
    bf1_p = jnp.zeros((1, NFH2_pad), jnp.float32).at[:, :NFH2].set(
        bf1.reshape(1, NFH2))

    # fused finger output layer: block-diagonal (NFH2_pad, NF_pad) bf16
    wf2_vec = wf2_eff.reshape(n_f, h2)                             # (n_f, h2)
    eye = jnp.eye(n_f, dtype=jnp.float32)                          # (n_f, n_f)
    wf2_bd = (wf2_vec[:, :, None] * eye[:, None, :]).reshape(NFH2, n_f)
    wf2_p = (jnp.zeros((NFH2_pad, NF_pad), jnp.float32)
             .at[:NFH2, :n_f].set(wf2_bd)).astype(jnp.bfloat16)
    bf2_p = jnp.zeros((1, NF_pad), jnp.float32).at[:, :n_f].set(
        bf2.reshape(1, n_f))

    kernel_params = (w1_p, b1_p, wf1_p, bf1_p, wf2_p, bf2_p)
    return reference_params, kernel_params


def reference_forward(x, w1, b1, wf1, bf1, wf2, bf2):
    """Pure-f32 mirror of the PyTorch forward; returns stacked (B, n_f)."""
    h = _selu(x @ w1 + b1)                            # (B, H1)
    outs = []
    for f in range(wf1.shape[0]):
        z = _selu(h @ wf1[f] + bf1[f])                # (B, H2)
        y = z @ wf2[f].T + bf2[f]                     # (B, 1)
        outs.append(y)
    return jnp.concatenate(outs, axis=-1)             # (B, n_f)


def reference_forward_bf16(x, kernel_params, n_f):
    """f32-math mirror of the kernel's bf16-operand dots (quantization-aware)."""
    w1_p, b1_p, wf1_p, bf1_p, wf2_p, bf2_p = kernel_params
    w1 = w1_p.astype(jnp.float32)
    wf1 = wf1_p.astype(jnp.float32)
    wf2 = wf2_p.astype(jnp.float32)
    xq = x.astype(jnp.bfloat16).astype(jnp.float32)
    h = _selu(xq @ w1 + b1_p)
    hq = h.astype(jnp.bfloat16).astype(jnp.float32)
    z = _selu(hq @ wf1 + bf1_p)
    zq = z.astype(jnp.bfloat16).astype(jnp.float32)
    y = zq @ wf2 + bf2_p
    return y[:, :n_f]


if __name__ == "__main__":
    B, D_IN, H1, H2, NUM_FACTORS = 8, 300, 100, 20, 19

    key = jax.random.PRNGKey(0)
    k_x, k_p = jax.random.split(key)
    x = jax.random.normal(k_x, (B, D_IN), jnp.float32)
    ref_params, ker_params = make_params(k_p, D_IN, H1, H2, NUM_FACTORS)

    out = bindspace_forward(x, *ker_params, NUM_FACTORS)    # (B, n_f)
    out = jax.block_until_ready(out)
    assert out.shape == (B, NUM_FACTORS)

    # Tight check against a f32-math mirror of the kernel's bf16-operand dots.
    ref_q = reference_forward_bf16(x, ker_params, NUM_FACTORS)
    assert jnp.allclose(out, ref_q, atol=2e-3, rtol=2e-3)

    # Loose check against the pure-f32 PyTorch-semantics reference
    # (bf16 MXU operands => ~1e-2-level relative error is expected).
    ref = reference_forward(x, *ref_params)                 # (B, n_f)
    assert jnp.allclose(out, ref, atol=2e-1, rtol=2e-1)

    # PyTorch list-of-(B,1) view, if needed, is a host-side lazy split:
    outs_list = split_fingers(out)
    assert len(outs_list) == NUM_FACTORS and outs_list[0].shape == (B, 1)

    print("KERNEL_OK")
</pallas_src>

<mosaic_0001>
module attributes {stable_mosaic.version = 11 : i64} {
  func.func @_bindspace_kernel(%arg0: i32, %arg1: memref<8x300xf32, #tpu.memory_space<vmem>>, %arg2: memref<300x128xbf16, #tpu.memory_space<vmem>>, %arg3: memref<1x128xf32, #tpu.memory_space<vmem>>, %arg4: memref<128x384xbf16, #tpu.memory_space<vmem>>, %arg5: memref<1x384xf32, #tpu.memory_space<vmem>>, %arg6: memref<384x128xbf16, #tpu.memory_space<vmem>>, %arg7: memref<1x128xf32, #tpu.memory_space<vmem>>, %arg8: memref<8x128xf32, #tpu.memory_space<vmem>>) attributes {dimension_semantics = [#tpu.dimension_semantics<parallel>], iteration_bounds = array<i64: 1>, scalar_prefetch = 0 : i64, scratch_operands = 0 : i64, tpu.core_type = #tpu.core_type<tc>, window_params = [{transform_indices = @transform_0, window_bounds = array<i64: 8, 300>}, {pipeline_mode = #tpu.pipeline_mode<synchronous>, transform_indices = @transform_1, window_bounds = array<i64: 300, 128>}, {pipeline_mode = #tpu.pipeline_mode<synchronous>, transform_indices = @transform_2, window_bounds = array<i64: 1, 128>}, {pipeline_mode = #tpu.pipeline_mode<synchronous>, transform_indices = @transform_3, window_bounds = array<i64: 128, 384>}, {pipeline_mode = #tpu.pipeline_mode<synchronous>, transform_indices = @transform_4, window_bounds = array<i64: 1, 384>}, {pipeline_mode = #tpu.pipeline_mode<synchronous>, transform_indices = @transform_5, window_bounds = array<i64: 384, 128>}, {pipeline_mode = #tpu.pipeline_mode<synchronous>, transform_indices = @transform_6, window_bounds = array<i64: 1, 128>}, {transform_indices = @transform_7, window_bounds = array<i64: 8, 128>}]} {
    %c0 = arith.constant 0 : index
    %c0_0 = arith.constant 0 : index
    %0 = vector.load %arg1[%c0, %c0_0] : memref<8x300xf32, #tpu.memory_space<vmem>>, vector<8x300xf32>
    %1 = arith.truncf %0 : vector<8x300xf32> to vector<8x300xbf16>
    %c0_1 = arith.constant 0 : index
    %c0_2 = arith.constant 0 : index
    %2 = vector.load %arg2[%c0_1, %c0_2] : memref<300x128xbf16, #tpu.memory_space<vmem>>, vector<300x128xbf16>
    %cst = arith.constant dense<0.000000e+00> : vector<8x128xf32>
    %3 = tpu.matmul %1, %2, %cst {dimension_numbers = #tpu.dot_dimension_numbers<[1], [0], [0], [1], [0, 0, 1, 1], [], []>} : vector<8x300xbf16>, vector<300x128xbf16>, vector<8x128xf32> -> vector<8x128xf32>
    %c0_3 = arith.constant 0 : index
    %c0_4 = arith.constant 0 : index
    %4 = vector.load %arg3[%c0_3, %c0_4] : memref<1x128xf32, #tpu.memory_space<vmem>>, vector<1x128xf32>
    %5 = vector.broadcast %4 : vector<1x128xf32> to vector<8x128xf32>
    %6 = arith.addf %3, %5 : vector<8x128xf32>
    %cst_5 = arith.constant 0.000000e+00 : f32
    %7 = vector.broadcast %cst_5 : f32 to vector<8x128xf32>
    %8 = arith.cmpf ogt, %6, %7 : vector<8x128xf32>
    %cst_6 = arith.constant 0.000000e+00 : f32
    %9 = vector.broadcast %cst_6 : f32 to vector<8x128xf32>
    %10 = arith.minimumf %6, %9 : vector<8x128xf32>
    %11 = math.exp %10 : vector<8x128xf32>
    %cst_7 = arith.constant 1.000000e+00 : f32
    %12 = vector.broadcast %cst_7 : f32 to vector<8x128xf32>
    %13 = arith.subf %11, %12 : vector<8x128xf32>
    %cst_8 = arith.constant 1.67326319 : f32
    %14 = vector.broadcast %cst_8 : f32 to vector<8x128xf32>
    %15 = arith.mulf %14, %13 : vector<8x128xf32>
    %16 = arith.select %8, %6, %15 : vector<8x128xi1>, vector<8x128xf32>
    %cst_9 = arith.constant 1.05070102 : f32
    %17 = vector.broadcast %cst_9 : f32 to vector<8x128xf32>
    %18 = arith.mulf %17, %16 : vector<8x128xf32>
    %19 = arith.truncf %18 : vector<8x128xf32> to vector<8x128xbf16>
    %c0_10 = arith.constant 0 : index
    %c0_11 = arith.constant 0 : index
    %20 = vector.load %arg4[%c0_10, %c0_11] : memref<128x384xbf16, #tpu.memory_space<vmem>>, vector<128x384xbf16>
    %cst_12 = arith.constant dense<0.000000e+00> : vector<8x384xf32>
    %21 = tpu.matmul %19, %20, %cst_12 {dimension_numbers = #tpu.dot_dimension_numbers<[1], [0], [0], [1], [0, 0, 1, 1], [], []>} : vector<8x128xbf16>, vector<128x384xbf16>, vector<8x384xf32> -> vector<8x384xf32>
    %c0_13 = arith.constant 0 : index
    %c0_14 = arith.constant 0 : index
    %22 = vector.load %arg5[%c0_13, %c0_14] : memref<1x384xf32, #tpu.memory_space<vmem>>, vector<1x384xf32>
    %23 = vector.broadcast %22 : vector<1x384xf32> to vector<8x384xf32>
    %24 = arith.addf %21, %23 : vector<8x384xf32>
    %cst_15 = arith.constant 0.000000e+00 : f32
    %25 = vector.broadcast %cst_15 : f32 to vector<8x384xf32>
    %26 = arith.cmpf ogt, %24, %25 : vector<8x384xf32>
    %cst_16 = arith.constant 0.000000e+00 : f32
    %27 = vector.broadcast %cst_16 : f32 to vector<8x384xf32>
    %28 = arith.minimumf %24, %27 : vector<8x384xf32>
    %29 = math.exp %28 : vector<8x384xf32>
    %cst_17 = arith.constant 1.000000e+00 : f32
    %30 = vector.broadcast %cst_17 : f32 to vector<8x384xf32>
    %31 = arith.subf %29, %30 : vector<8x384xf32>
    %cst_18 = arith.constant 1.67326319 : f32
    %32 = vector.broadcast %cst_18 : f32 to vector<8x384xf32>
    %33 = arith.mulf %32, %31 : vector<8x384xf32>
    %34 = arith.select %26, %24, %33 : vector<8x384xi1>, vector<8x384xf32>
    %cst_19 = arith.constant 1.05070102 : f32
    %35 = vector.broadcast %cst_19 : f32 to vector<8x384xf32>
    %36 = arith.mulf %35, %34 : vector<8x384xf32>
    %37 = arith.truncf %36 : vector<8x384xf32> to vector<8x384xbf16>
    %c0_20 = arith.constant 0 : index
    %c0_21 = arith.constant 0 : index
    %38 = vector.load %arg6[%c0_20, %c0_21] : memref<384x128xbf16, #tpu.memory_space<vmem>>, vector<384x128xbf16>
    %cst_22 = arith.constant dense<0.000000e+00> : vector<8x128xf32>
    %39 = tpu.matmul %37, %38, %cst_22 {dimension_numbers = #tpu.dot_dimension_numbers<[1], [0], [0], [1], [0, 0, 1, 1], [], []>} : vector<8x384xbf16>, vector<384x128xbf16>, vector<8x128xf32> -> vector<8x128xf32>
    %c0_23 = arith.constant 0 : index
    %c0_24 = arith.constant 0 : index
    %40 = vector.load %arg7[%c0_23, %c0_24] : memref<1x128xf32, #tpu.memory_space<vmem>>, vector<1x128xf32>
    %41 = vector.broadcast %40 : vector<1x128xf32> to vector<8x128xf32>
    %42 = arith.addf %39, %41 : vector<8x128xf32>
    %c0_25 = arith.constant 0 : index
    %c0_26 = arith.constant 0 : index
    %43 = vector.load %arg8[%c0_25, %c0_26] : memref<8x128xf32, #tpu.memory_space<vmem>>, vector<8x128xf32>
    tpu.vector_store %arg8[%c0_25, %c0_26], %42 {strides = array<i32>} : memref<8x128xf32, #tpu.memory_space<vmem>>, vector<8x128xf32>,
    return
  }
  func.func @transform_0(%arg0: i32) -> (i32, i32) {
    %c0_i32 = arith.constant 0 : i32
    %c0_i32_0 = arith.constant 0 : i32
    return %arg0, %c0_i32 : i32, i32
  }
  func.func @transform_1(%arg0: i32) -> (i32, i32) {
    %c0_i32 = arith.constant 0 : i32
    %c0_i32_0 = arith.constant 0 : i32
    %c0_i32_1 = arith.constant 0 : i32
    return %c0_i32, %c0_i32_0 : i32, i32
  }
  func.func @transform_2(%arg0: i32) -> (i32, i32) {
    %c0_i32 = arith.constant 0 : i32
    %c0_i32_0 = arith.constant 0 : i32
    %c0_i32_1 = arith.constant 0 : i32
    return %c0_i32, %c0_i32_0 : i32, i32
  }
  func.func @transform_3(%arg0: i32) -> (i32, i32) {
    %c0_i32 = arith.constant 0 : i32
    %c0_i32_0 = arith.constant 0 : i32
    %c0_i32_1 = arith.constant 0 : i32
    return %c0_i32, %c0_i32_0 : i32, i32
  }
  func.func @transform_4(%arg0: i32) -> (i32, i32) {
    %c0_i32 = arith.constant 0 : i32
    %c0_i32_0 = arith.constant 0 : i32
    %c0_i32_1 = arith.constant 0 : i32
    return %c0_i32, %c0_i32_0 : i32, i32
  }
  func.func @transform_5(%arg0: i32) -> (i32, i32) {
    %c0_i32 = arith.constant 0 : i32
    %c0_i32_0 = arith.constant 0 : i32
    %c0_i32_1 = arith.constant 0 : i32
    return %c0_i32, %c0_i32_0 : i32, i32
  }
  func.func @transform_6(%arg0: i32) -> (i32, i32) {
    %c0_i32 = arith.constant 0 : i32
    %c0_i32_0 = arith.constant 0 : i32
    %c0_i32_1 = arith.constant 0 : i32
    return %c0_i32, %c0_i32_0 : i32, i32
  }
  func.func @transform_7(%arg0: i32) -> (i32, i32) {
    %c0_i32 = arith.constant 0 : i32
    %c0_i32_0 = arith.constant 0 : i32
    return %arg0, %c0_i32 : i32, i32
  }
}

</mosaic_0001>

<bundles_post_ra>
// kernel: tpu_custom_call.1
= control target key start
LH: loop header
LB: loop body
LE: loop exit
PB: predicated region body
PF: predicated region fallthrough
CT: control target
= control target key end

     0   :  { %12 = vsyncpa [#allocation3], 0  ;;  %s1479_s0 = inlined_call_operand.hbm [shape: f32[8,300], index: 0, kind: input, shape index: {}]   ;;  %s1480_s1 = inlined_call_operand.hbm [shape: bf16[300,128], index: 1, kind: input, shape index: {}]   ;;  %s1481_s2 = inlined_call_operand.vmem [shape: f32[1,128], index: 2, kind: input, shape index: {}]   ;;  %s1482_s3 = inlined_call_operand.hbm [shape: bf16[128,384], index: 3, kind: input, shape index: {}]   ;;  %s1483_s4 = inlined_call_operand.vmem [shape: f32[1,384], index: 4, kind: input, shape index: {}]   ;;  %s1484_s5 = inlined_call_operand.hbm [shape: bf16[384,128], index: 5, kind: input, shape index: {}]   ;;  %s1485_s6 = inlined_call_operand.vmem [shape: f32[1,128], index: 6, kind: input, shape index: {}]   ;;  %s1486_s7 = inlined_call_operand.hbm [shape: f32[8,128], index: 7, kind: output, shape index: {}]  }
   0x1   :  { %13 = vsyncpa [#allocation6], 0 }
   0x2   :  { %14 = vsyncpa [#allocation9], 0 }
   0x3   :  { %15 = vsyncpa [#allocation4], 0  ;;  %s1327_s24 = smov [#allocation5]   ;;  %s1209_s28 = scalar_lea.hbm %s1480_s1, 2432 }
   0x4   :  { %s31_s25 = sshll.u32 %s1327_s24, 4  ;;  %p1210_p0 = scmp.ne.s32.totalorder %s1480_s1, %s1209_s28  ;;  %s32_s25 = int_to_ptr.vmem [resolvable:$true] %s31_s25 }
   0x5   :  { %p1213_p1 = scmp.lt.u32.totalorder %s1209_s28, %s1480_s1 }
   0x7   :  { %p1215_p2 = pnand %p1213_p1, %p1210_p0 }
   0x9   :  { %1218 = shalt.err (!%p1215_p2)
}
   0xa   :  { %s1219_s10 = scalar_lea.vmem %s32_s25, 2432  ;;  %p1224_p4 = scmp.lt.s32.totalorder %s32_s25, %s32_s25 }
   0xb   :  { %p1220_p3 = scmp.ne.s32.totalorder %s32_s25, %s1219_s10  ;;  %p1225_p5 = scmp.lt.s32.totalorder %s1219_s10, %s1219_s10 }
   0xd   :  { %p1226_p6 = por %p1225_p5, %p1224_p4 }
   0xf   :  { %p1227_p7 = pnand %p1226_p6, %p1220_p3 }
  0x11   :  { %1230 = shalt.err (!%p1227_p7)
}
  0x12   :  { %s1328_s11 = smov 64   ;;  %s1329_s12 = smov 4  }
  0x13   :  { %37 = dma.hbm_to_vmem [thread:$0]  %s1480_s1, 2432, %s32_s25, [#allocation6], %s1328_s11, %s1328_s11, %s1329_s12  }
  0x14   :  { %s1330_s15 = smov [#allocation2]   ;;  %s1331_s17 = smov [#allocation7]  }
  0x15   :  { %s22_s16 = sshll.u32 %s1330_s15, 4  ;;  %s45_s18 = sshll.u32 %s1331_s17, 4  ;;  %s23_s16 = int_to_ptr.vmem [resolvable:$true] %s22_s16  ;;  %s46_s18 = int_to_ptr.vmem [resolvable:$true] %s45_s18 }
  0x16   :  { %s1231_s21 = scalar_lea.hbm %s1479_s0, 384 }
  0x17   :  { %p1232_p8 = scmp.ne.s32.totalorder %s1479_s0, %s1231_s21  ;;  %p1235_p9 = scmp.lt.u32.totalorder %s1231_s21, %s1479_s0 }
  0x19   :  { %p1237_p10 = pnand %p1235_p9, %p1232_p8 }
  0x1b   :  { %1240 = shalt.err (!%p1237_p10)
}
  0x1c   :  { %s1241_s1 = scalar_lea.vmem %s23_s16, 384  ;;  %p1246_p12 = scmp.lt.s32.totalorder %s23_s16, %s23_s16 }
  0x1d   :  { %p1242_p11 = scmp.ne.s32.totalorder %s23_s16, %s1241_s1  ;;  %p1247_p13 = scmp.lt.s32.totalorder %s1241_s1, %s1241_s1 }
  0x1f   :  { %p1248_p0 = por %p1247_p13, %p1246_p12 }
  0x21   :  { %p1249_p1 = pnand %p1248_p0, %p1242_p11 }
  0x23   :  { %1252 = shalt.err (!%p1249_p1)
}
  0x24   :  { %25 = dma.hbm_to_vmem [thread:$0]  %s1479_s0, 384, %s23_s16, [#allocation3]  }
  0x25   :  { %s1253_s30 = scalar_lea.hbm %s1482_s3, 3072 }
  0x26   :  { %p1254_p2 = scmp.ne.s32.totalorder %s1482_s3, %s1253_s30  ;;  %p1257_p3 = scmp.lt.u32.totalorder %s1253_s30, %s1482_s3 }
  0x28   :  { %p1259_p4 = pnand %p1257_p3, %p1254_p2 }
  0x2a   :  { %1262 = shalt.err (!%p1259_p4)
}
  0x2b   :  { %s1263_s14 = scalar_lea.vmem %s46_s18, 3072  ;;  %p1268_p6 = scmp.lt.s32.totalorder %s46_s18, %s46_s18 }
  0x2c   :  { %p1264_p5 = scmp.ne.s32.totalorder %s46_s18, %s1263_s14  ;;  %p1269_p7 = scmp.lt.s32.totalorder %s1263_s14, %s1263_s14 }
  0x2e   :  { %p1270_p8 = por %p1269_p7, %p1268_p6 }
  0x30   :  { %p1271_p9 = pnand %p1270_p8, %p1264_p5 }
  0x32   :  { %1274 = shalt.err (!%p1271_p9)
}
  0x33   :  { %s1332_s0 = smov 192   ;;  %s1333_s15 = smov 12  }
  0x34   :  { %51 = dma.hbm_to_vmem [thread:$0]  %s1482_s3, 3072, %s46_s18, [#allocation6], %s1332_s0, %s1332_s0, %s1333_s15  }
  0x35   :  { %s1334_s19 = smov [#allocation8]   ;;  %s1275_s23 = scalar_lea.hbm %s1484_s5, 3072 }
  0x36   :  { %s59_s20 = sshll.u32 %s1334_s19, 4  ;;  %p1276_p10 = scmp.ne.s32.totalorder %s1484_s5, %s1275_s23  ;;  %s60_s20 = int_to_ptr.vmem [resolvable:$true] %s59_s20 }
  0x37   :  { %p1279_p11 = scmp.lt.u32.totalorder %s1275_s23, %s1484_s5 }
  0x39   :  { %p1281_p12 = pnand %p1279_p11, %p1276_p10 }
  0x3b   :  { %1284 = shalt.err (!%p1281_p12)
}
  0x3c   :  { %s1285_s27 = scalar_lea.vmem %s60_s20, 3072  ;;  %p1290_p0 = scmp.lt.s32.totalorder %s60_s20, %s60_s20 }
  0x3d   :  { %p1286_p13 = scmp.ne.s32.totalorder %s60_s20, %s1285_s27  ;;  %p1291_p1 = scmp.lt.s32.totalorder %s1285_s27, %s1285_s27 }
  0x3f   :  { %p1292_p2 = por %p1291_p1, %p1290_p0 }
  0x41   :  { %p1293_p3 = pnand %p1292_p2, %p1286_p13 }
  0x43   :  { %1296 = shalt.err (!%p1293_p3)
}
  0x44   :  { %65 = dma.hbm_to_vmem [thread:$0]  %s1484_s5, 3072, %s60_s20, [#allocation9], %s1328_s11, %s1328_s11, %s1329_s12  }
  0x45   :  { %1319 = dma.done.wait [#allocation3], 384  }
  0x46   :  { %1320 = vsyncadd [#allocation3], 4294966912 }
  0x47   :  { %1321 = dma.done.wait [#allocation6], 5504  }
  0x48   :  { %1322 = vsyncadd [#allocation6], 4294961792 }
  0x49   :  { %1323 = dma.done.wait [#allocation9], 3072  }
  0x4a   :  { %1324 = vsyncadd [#allocation9], 4294964224  ;;  %v1335_v0 = vmov 0.0   ;;  %vm1336_vm0 = vmmov 0   ;;  %v1126_v1 = vld [vmem:[#allocation5 + $0x40] sm:$0xff]   ;;  %v1128_v3 = vld [vmem:[#allocation5 + $0x48] sm:$0xff]  }
  0x4b   :  { %1064 = vmatprep.subr.bf16.mxu1 %v1335_v0  ;;  %1070 = vmatprep.mubr.msk.bf16.mxu1 %vm1336_vm0, %v1335_v0  ;;  %v1127_v2 = vld [vmem:[#allocation5] sm:$0xff]   ;;  %v1129_v4 = vld [vmem:[#allocation5 + $0x8] sm:$0xff]   ;;  %v1130_v5 = vld [vmem:[#allocation5 + $0x50] sm:$0xff]   ;;  %vm249_vm1 = vcmask 1045504   ;;  %vm245_vm2 = vcmask 359424   ;;  %v1337_v51 = vmov 0  }
  0x4c   :  { %998 = vmatprep.subr.bf16.mxu0 %v1126_v1  ;;  %v1131_v6 = vld [vmem:[#allocation5 + $0x10] sm:$0xff]   ;;  %v1132_v7 = vld [vmem:[#allocation5 + $0x58] sm:$0xff]   ;;  %v1134_v9 = vld [vmem:[#allocation5 + $0x60] sm:$0xff]   ;;  %s1338_s29 = smov [#allocation10]  }
  0x4d   :  { %999 = vmatpush3.bf16.msra.mxu0 %v1127_v2  ;;  %v1133_v8 = vld [vmem:[#allocation5 + $0x18] sm:$0xff]   ;;  %v1138_v10 = vld [vmem:[#allocation5 + $0x80] sm:$0xff]   ;;  %v1141_v12 = vld [vmem:[#allocation5 + $0x88] sm:$0xff]   ;;  %s913_s30 = sshll.u32 %s1338_s29, 4  ;;  %s914_s30 = int_to_ptr.vmem [resolvable:$true] %s913_s30 }
  0x4e   :  { %1000 = vmatprep.subr.bf16.mxu0 %v1128_v3  ;;  %v1135_v11 = vld [vmem:[#allocation5 + $0x20] sm:$0xff]   ;;  %1065 = vmatpush3.bf16.msra.mxu1 %v1138_v10  ;;  %v1136_v13 = vld [vmem:[#allocation5 + $0x68] sm:$0xff]   ;;  %v82_v15 = vld [vmem:[#allocation2 + $0x8] sm:$0xff]  ;;  %s1297_s8 = scalar_lea.vmem %s914_s30, 128  ;;  %p1302_p5 = scmp.lt.s32.totalorder %s914_s30, %s914_s30 }
  0x4f   :  { %1066 = vmatprep.subr.bf16.mxu1 %v1335_v0  ;;  %v1137_v14 = vld [vmem:[#allocation5 + $0x28] sm:$0xff]   ;;  %v1139_v16 = vld [vmem:[#allocation5 + $0x70] sm:$0xff]   ;;  %v85_v17 = vpack.c.bf16 %v82_v15, %v82_v15  ;;  %v83_v19 = vld [vmem:[#allocation2 + $0x10] sm:$0xff]  ;;  %p1298_p4 = scmp.ne.s32.totalorder %s914_s30, %s1297_s8  ;;  %p1303_p6 = scmp.lt.s32.totalorder %s1297_s8, %s1297_s8 }
  0x50   :  { %v1144_v18 = vld [vmem:[#allocation5 + $0x90] sm:$0x3f]   ;;  %v86_v22 = vpack.c.bf16 %v83_v19, %v83_v19  ;;  %v1142_v23 = vld [vmem:[#allocation5 + $0x78] sm:$0xff]   ;;  %v81_v25 = vld [vmem:[#allocation2] sm:$0xff] }
  0x51   :  { %1001 = vmatpush3.bf16.msra.mxu0 %v1129_v4  ;;  %v1140_v20 = vld [vmem:[#allocation5 + $0x30] sm:$0xff]   ;;  %285 = vmatprep.mubr.bf16.mxu0 %v85_v17  ;;  %v251_v21 = vsel %vm249_vm1, %v1144_v18, 0  ;;  %v1143_v24 = vld [vmem:[#allocation5 + $0x38] sm:$0xff]   ;;  %v84_v26 = vpack.c.bf16 %v81_v25, %v81_v25  ;;  %v1148_v29 = vld [vmem:[#allocation7 + $0x8] ss:$12 sps:$4 sm:$0xff]   ;;  %p1304_p7 = por %p1303_p6, %p1302_p5 }
  0x52   :  { %1002 = vmatprep.subr.bf16.mxu0 %v1130_v5  ;;  %1067 = vmatpush3.bf16.msra.mxu1 %v1141_v12  ;;  %v1147_v27 = vld [vmem:[#allocation7 + $0x4] ss:$12 sps:$4 sm:$0xff]   ;;  %v1145_v28 = vld [vmem:[#allocation7] ss:$12 sps:$4 sm:$0xff]   ;;  %v1151_v30 = vld [vmem:[#allocation7 + $0x1c] ss:$12 sps:$4 sm:$0xff]  }
  0x53   :  { %1068 = vmatprep.subr.bf16.mxu1 %v1335_v0  ;;  %v1149_v31 = vld [vmem:[#allocation7 + $0x18] ss:$12 sps:$4 sm:$0xff]   ;;  %v1152_v32 = vld [vmem:[#allocation7 + $0x20] ss:$12 sps:$4 sm:$0xff]   ;;  %v1153_v34 = vld [vmem:[#allocation7 + $0x30] ss:$12 sps:$4 sm:$0xff]   ;;  %p1305_p8 = pnand %p1304_p7, %p1298_p4 }
  0x54   :  { %v1155_v33 = vld [vmem:[#allocation7 + $0x34] ss:$12 sps:$4 sm:$0xff]   ;;  %v1156_v35 = vld [vmem:[#allocation7 + $0x38] ss:$12 sps:$4 sm:$0xff]   ;;  %v1160_v38 = vld [vmem:[#allocation7 + $0x50] ss:$12 sps:$4 sm:$0xff]  }
  0x55   :  { %1003 = vmatpush3.bf16.msra.mxu0 %v1131_v6  ;;  %v1159_v36 = vld [vmem:[#allocation7 + $0x4c] ss:$12 sps:$4 sm:$0xff]   ;;  %v1157_v37 = vld [vmem:[#allocation7 + $0x48] ss:$12 sps:$4 sm:$0xff]   ;;  %v1163_v39 = vld [vmem:[#allocation7 + $0x64] ss:$12 sps:$4 sm:$0xff]  }
  0x56   :  { %1004 = vmatprep.subr.bf16.mxu0 %v1132_v7  ;;  %1069 = vmatpush3.bf16.msra.mxu1 %v251_v21  ;;  %v1161_v40 = vld [vmem:[#allocation7 + $0x60] ss:$12 sps:$4 sm:$0xff]   ;;  %v1164_v41 = vld [vmem:[#allocation7 + $0x68] ss:$12 sps:$4 sm:$0xff]   ;;  %v1165_v43 = vld [vmem:[#allocation7 + $0x78] ss:$12 sps:$4 sm:$0xff]  }
  0x57   :  { %519 = vmatprep.subr.bf16.mxu1 %v1147_v27  ;;  %v1167_v42 = vld [vmem:[#allocation7 + $0x7c] ss:$12 sps:$4 sm:$0xff]   ;;  %v1168_v44 = vld [vmem:[#allocation7 + $0x80] ss:$12 sps:$4 sm:$0xff]   ;;  %v1172_v47 = vld [vmem:[#allocation7 + $0x98] ss:$12 sps:$4 sm:$0xff]  }
  0x58   :  { %v1171_v45 = vld [vmem:[#allocation7 + $0x94] ss:$12 sps:$4 sm:$0xff]   ;;  %v1169_v46 = vld [vmem:[#allocation7 + $0x90] ss:$12 sps:$4 sm:$0xff]   ;;  %v1175_v48 = vld [vmem:[#allocation7 + $0xac] ss:$12 sps:$4 sm:$0xff]  }
  0x59   :  { %1005 = vmatpush3.bf16.msra.mxu0 %v1133_v8  ;;  %1071 = vmatmul.mubr.msk.bf16.vlgmr.msra.gmra.mrb[0].mxu1 %vm245_vm2, %v86_v22  ;;  %v1173_v49 = vld [vmem:[#allocation7 + $0xa8] ss:$12 sps:$4 sm:$0xff]   ;;  %v1176_v50 = vld [vmem:[#allocation7 + $0xb0] ss:$12 sps:$4 sm:$0xff]   ;;  %v1178_v52 = vld [vmem:[#allocation8 + $0x40] sm:$0xff]  }
  0x5a   :  { %1006 = vmatprep.subr.bf16.mxu0 %v1134_v9  ;;  %520 = vmatpush1.bf16.msra.mxu1 %v1145_v28  ;;  %v924_v59 = vld [vmem:[%s1481_s2] ss:$0 sm:$0xff]  ;;  %v1177_v9 = vld [vmem:[#allocation8 + $0x80] sm:$0xff]   ;;  %v1180_v12 = vld [vmem:[#allocation8 + $0x88] sm:$0xff]  }
  0x5b   :  { %521 = vmatprep.subr.bf16.mxu1 %v1151_v30  ;;  %551 = vmatprep.mubr.bf16.mxu1 %v1337_v51  ;;  %v1179_v10 = vld [vmem:[#allocation8] sm:$0xff]   ;;  %v1183_v15 = vld [vmem:[#allocation8 + $0x90] sm:$0xff]   ;;  %v1186_v18 = vld [vmem:[#allocation8 + $0x98] sm:$0xff]  }
  0x5c   :  { %v1185_v17 = vld [vmem:[#allocation8 + $0x10] sm:$0xff]   ;;  %v1187_v19 = vld [vmem:[#allocation8 + $0x58] sm:$0xff]   ;;  %v1189_v21 = vld [vmem:[#allocation8 + $0xa0] sm:$0xff]  }
  0x5d   :  { %1007 = vmatpush3.bf16.msra.mxu0 %v1135_v11  ;;  %v1190_v22 = vld [vmem:[#allocation8 + $0x60] sm:$0xff]   ;;  %v1193_v25 = vld [vmem:[#allocation8 + $0x68] sm:$0xff]   ;;  %v1195_v27 = vld [vmem:[#allocation8 + $0xb0] sm:$0xff]  }
  0x5e   :  { %1008 = vmatprep.subr.bf16.mxu0 %v1136_v13  ;;  %522 = vmatpush1.bf16.msra.mxu1 %v1149_v31  ;;  %v1181_v13 = vld [vmem:[#allocation8 + $0x48] sm:$0xff]   ;;  %v1196_v28 = vld [vmem:[#allocation8 + $0x70] sm:$0xff]   ;;  %v1198_v30 = vld [vmem:[#allocation8 + $0xb8] sm:$0xff]  }
  0x5f   :  { %523 = vmatprep.subr.bf16.mxu1 %v1155_v33  ;;  %v1199_v31 = vld [vmem:[#allocation8 + $0x78] sm:$0xff]   ;;  %v376_v33 = vlaneseq }
  0x61   :  { %1009 = vmatpush3.bf16.msra.mxu0 %v1137_v14  ;;  %v1182_v14 = vld [vmem:[#allocation8 + $0x8] sm:$0xff]  }
  0x62   :  { %1010 = vmatprep.subr.bf16.mxu0 %v1139_v16  ;;  %524 = vmatpush1.bf16.msra.mxu1 %v1153_v34  ;;  %v1184_v16 = vld [vmem:[#allocation8 + $0x50] sm:$0xff]   ;;  %v377_v34 = vshrl.u32 %v376_v33, 7 }
  0x63   :  { %525 = vmatprep.subr.bf16.mxu1 %v1159_v36 }
  0x64   :  { %v386_v36 = vsub.s32 2, %v377_v34 }
  0x65   :  { %1011 = vmatpush3.bf16.msra.mxu0 %v1140_v20  ;;  %v1188_v20 = vld [vmem:[#allocation8 + $0x18] sm:$0xff]  }
  0x66   :  { %1012 = vmatprep.subr.bf16.mxu0 %v1142_v23  ;;  %526 = vmatpush1.bf16.msra.mxu1 %v1157_v37  ;;  %v1191_v23 = vld [vmem:[#allocation8 + $0x20] sm:$0xff]   ;;  %v374_v37 = vld [vmem:[%s1483_s4] sm:$0x7] }
  0x67   :  { %527 = vmatprep.subr.bf16.mxu1 %v1163_v39 }
  0x69   :  { %1013 = vmatpush3.bf16.msra.mxu0 %v1143_v24  ;;  %v1192_v24 = vld [vmem:[#allocation8 + $0xa8] sm:$0xff]  }
  0x6a   :  { %1074 = vmatprep.subr.bf16.mxu0 %v1335_v0  ;;  %528 = vmatpush1.bf16.msra.mxu1 %v1161_v40  ;;  %v387_v40 = vrot.slane %v374_v37, %v386_v36 }
  0x6b   :  { %529 = vmatprep.subr.bf16.mxu1 %v1167_v42 }
  0x6c   :  { %286 = vmatmul.mubr.bf16.vlgmr.msra.gmra.mrb[0].mxu0 %v84_v26  ;;  %v1194_v26 = vld [vmem:[#allocation8 + $0x28] sm:$0xff]  }
  0x6d   :  { %1090 = vmatprep.mubr.msk.bf16.mxu0 %vm1336_vm0, %v1335_v0  ;;  %1075 = vmatpush3.bf16.msra.mxu0 %v1148_v29  ;;  %v1197_v29 = vld [vmem:[#allocation8 + $0x30] sm:$0xff]  }
  0x6e   :  { %1076 = vmatprep.subr.bf16.mxu0 %v1335_v0  ;;  %530 = vmatpush1.bf16.msra.mxu1 %v1165_v43 }
  0x6f   :  { %531 = vmatprep.subr.bf16.mxu1 %v1171_v45 }
  0x71   :  { %1077 = vmatpush3.bf16.msra.mxu0 %v1152_v32  ;;  %v1200_v32 = vld [vmem:[#allocation8 + $0x38] sm:$0xff]  }
  0x72   :  { %1078 = vmatprep.subr.bf16.mxu0 %v1335_v0  ;;  %532 = vmatpush1.bf16.msra.mxu1 %v1169_v46 }
  0x73   :  { %533 = vmatprep.subr.bf16.mxu1 %v1175_v48 }
  0x75   :  { %1079 = vmatpush3.bf16.msra.mxu0 %v1156_v35  ;;  %v378_v35 = vsub.s32 0, %v377_v34 }
  0x76   :  { %1080 = vmatprep.subr.bf16.mxu0 %v1335_v0  ;;  %534 = vmatpush1.bf16.msra.mxu1 %v1173_v49 }
  0x77   :  { %1033 = vmatprep.subr.bf16.mxu1 %v1178_v52  ;;  %v379_v39 = vrot.slane %v374_v37, %v378_v35 }
  0x79   :  { %1081 = vmatpush3.bf16.msra.mxu0 %v1160_v38  ;;  %v382_v38 = vsub.s32 1, %v377_v34 }
  0x7a   :  { %1082 = vmatprep.subr.bf16.mxu0 %v1335_v0 }
  0x7d   :  { %1083 = vmatpush3.bf16.msra.mxu0 %v1164_v41  ;;  %v383_v41 = vrot.slane %v374_v37, %v382_v38 }
  0x7e   :  { %1084 = vmatprep.subr.bf16.mxu0 %v1335_v0 }
  0x81   :  { %1085 = vmatpush3.bf16.msra.mxu0 %v1168_v44 }
  0x82   :  { %1086 = vmatprep.subr.bf16.mxu0 %v1335_v0 }
  0x85   :  { %1087 = vmatpush3.bf16.msra.mxu0 %v1172_v47 }
  0x86   :  { %1088 = vmatprep.subr.bf16.mxu0 %v1335_v0 }
  0x89   :  { %1089 = vmatpush3.bf16.msra.mxu0 %v1176_v50 }
  0x8a   :  { %1094 = vmatprep.subr.bf16.mxu0 %v1335_v0 }
 0x12c   :  { %v327_v53 = vpop.f32.mrb[0].mxu1 }
 0x12d   :  { %v1072_v54 = vpop.f32.mrb[1].mxu1 }
 0x12e   :  { %v330_v55 = vpop.f32.mrb[2].mxu1 }
 0x12f   :  { %v1073_v56 = vpop.f32.mrb[3].mxu1 }
 0x13f   :  { %v1014_v57 = vpop.f32.mrb[0].mxu0 }
 0x140   :  { %v1015_v58 = vpop.f32.mrb[1].mxu0 }
 0x141   :  { %v1016_v60 = vadd.f32 %v1015_v58, %v1014_v57  ;;  %v1017_v61 = vpop.f32.mrb[2].mxu0 }
 0x142   :  { %v1018_v62 = vpop.f32.mrb[3].mxu0 }
 0x143   :  { %v288_v63 = vadd.f32 %v1016_v60, %v924_v59 }
 0x145   :  { %v328_v1 = vadd.f32 %v327_v53, %v288_v63 }
 0x147   :  { %v334_v2 = vmin.f32 %v328_v1, 0.0  ;;  %vm333_vm3 = vcmp.gt.f32.partialorder %v328_v1, 0.0 }
 0x149   :  { %v335_v3 = vmul.f32 1.442695, %v334_v2 }
 0x14b   :  { %1201 = vpow2.f32 %v335_v3 }
 0x155   :  { %v1202_v4 = vpop.eup %1201 }
 0x156   :  { %v945_v5 = vadd.f32 -1.0, %v1202_v4 }
 0x158   :  { %v338_v6 = vmul.f32 1.6732632, %v945_v5 }
 0x15a   :  { %v339_v7 = vsel %vm333_vm3, %v328_v1, %v338_v6 }
 0x15b   :  { %v340_v8 = vmul.f32 1.050701, %v339_v7 }
 0x15d   :  { %v341_v11 = vpack.c.bf16 %v340_v8, %v340_v8 }
 0x15f   :  { %552 = vmatmul.mubr.bf16.vlgmr.msra.gmra.mrb[4].mxu1 %v341_v11  ;;  %1091 = vmatmul.mubr.bf16.vlgmr.msra.gmra.mrb[4].mxu0 %v341_v11 }
 0x160   :  { %1095 = vmatpush3.bf16.msra.mxu0 %v1177_v9  ;;  %1034 = vmatpush3.bf16.msra.mxu1 %v1179_v10 }
 0x161   :  { %1096 = vmatprep.subr.bf16.mxu0 %v1335_v0  ;;  %1110 = vmatprep.mubr.msk.bf16.mxu0 %vm1336_vm0, %v1335_v0 }
 0x162   :  { %1035 = vmatprep.subr.bf16.mxu1 %v1181_v13 }
 0x164   :  { %1097 = vmatpush3.bf16.msra.mxu0 %v1180_v12  ;;  %1036 = vmatpush3.bf16.msra.mxu1 %v1182_v14 }
 0x165   :  { %1098 = vmatprep.subr.bf16.mxu0 %v1335_v0  ;;  %1037 = vmatprep.subr.bf16.mxu1 %v1184_v16 }
 0x168   :  { %1099 = vmatpush3.bf16.msra.mxu0 %v1183_v15  ;;  %1038 = vmatpush3.bf16.msra.mxu1 %v1185_v17  ;;  %v973_v17 = vld [vmem:[%s1485_s6] ss:$0 sm:$0xff] }
 0x169   :  { %1100 = vmatprep.subr.bf16.mxu0 %v1335_v0  ;;  %1039 = vmatprep.subr.bf16.mxu1 %v1187_v19 }
 0x16c   :  { %1101 = vmatpush3.bf16.msra.mxu0 %v1186_v18  ;;  %1040 = vmatpush3.bf16.msra.mxu1 %v1188_v20 }
 0x16d   :  { %1102 = vmatprep.subr.bf16.mxu0 %v1335_v0  ;;  %1041 = vmatprep.subr.bf16.mxu1 %v1190_v22 }
 0x170   :  { %1103 = vmatpush3.bf16.msra.mxu0 %v1189_v21  ;;  %1042 = vmatpush3.bf16.msra.mxu1 %v1191_v23 }
 0x171   :  { %1104 = vmatprep.subr.bf16.mxu0 %v1335_v0  ;;  %1043 = vmatprep.subr.bf16.mxu1 %v1193_v25 }
 0x174   :  { %1105 = vmatpush3.bf16.msra.mxu0 %v1192_v24  ;;  %1044 = vmatpush3.bf16.msra.mxu1 %v1194_v26 }
 0x175   :  { %1106 = vmatprep.subr.bf16.mxu0 %v1335_v0  ;;  %1045 = vmatprep.subr.bf16.mxu1 %v1196_v28 }
 0x178   :  { %1107 = vmatpush3.bf16.msra.mxu0 %v1195_v27  ;;  %1046 = vmatpush3.bf16.msra.mxu1 %v1197_v29 }
 0x179   :  { %1108 = vmatprep.subr.bf16.mxu0 %v1335_v0  ;;  %1047 = vmatprep.subr.bf16.mxu1 %v1199_v31 }
 0x17c   :  { %1109 = vmatpush3.bf16.msra.mxu0 %v1198_v30  ;;  %1048 = vmatpush3.bf16.msra.mxu1 %v1200_v32 }
 0x232   :  { %v553_v0 = vpop.f32.mrb[4].mxu1  ;;  %v594_v42 = vpop.f32.mrb[4].mxu0 }
 0x233   :  { %v554_v43 = vadd.f32 %v553_v0, %v379_v39  ;;  %v595_v44 = vadd.f32 %v594_v42, %v387_v40  ;;  %v555_v45 = vpop.f32.mrb[5].mxu1  ;;  %v1092_v46 = vpop.f32.mrb[5].mxu0 }
 0x234   :  { %v556_v47 = vadd.f32 %v555_v45, %v383_v41  ;;  %v557_v48 = vpop.f32.mrb[6].mxu1  ;;  %v597_v49 = vpop.f32.mrb[6].mxu0 }
 0x235   :  { %v603_v50 = vmin.f32 %v554_v43, 0.0  ;;  %v605_v51 = vmin.f32 %v595_v44, 0.0  ;;  %v558_v52 = vpop.f32.mrb[7].mxu1  ;;  %v1093_v53 = vpop.f32.mrb[7].mxu0  ;;  %vm600_vm4 = vcmp.gt.f32.partialorder %v554_v43, 0.0  ;;  %vm602_vm5 = vcmp.gt.f32.partialorder %v595_v44, 0.0 }
 0x236   :  { %v604_v54 = vmin.f32 %v556_v47, 0.0  ;;  %vm601_vm6 = vcmp.gt.f32.partialorder %v556_v47, 0.0 }
 0x237   :  { %v606_v55 = vmul.f32 1.442695, %v603_v50  ;;  %v610_v56 = vmul.f32 1.442695, %v605_v51 }
 0x238   :  { %v608_v57 = vmul.f32 1.442695, %v604_v54 }
 0x239   :  { %1203 = vpow2.f32 %v606_v55 }
 0x23a   :  { %1205 = vpow2.f32 %v610_v56 }
 0x23b   :  { %1207 = vpow2.f32 %v608_v57 }
 0x243   :  { %v1204_v58 = vpop.eup %1203 }
 0x244   :  { %v1206_v59 = vpop.eup %1205  ;;  %v970_v60 = vadd.f32 -1.0, %v1204_v58 }
 0x245   :  { %v1208_v61 = vpop.eup %1207  ;;  %v972_v62 = vadd.f32 -1.0, %v1206_v59 }
 0x246   :  { %v615_v63 = vmul.f32 1.6732632, %v970_v60  ;;  %v971_v1 = vadd.f32 -1.0, %v1208_v61 }
 0x247   :  { %v617_v2 = vmul.f32 1.6732632, %v972_v62 }
 0x248   :  { %v618_v3 = vsel %vm600_vm4, %v554_v43, %v615_v63  ;;  %v616_v4 = vmul.f32 1.6732632, %v971_v1 }
 0x249   :  { %v620_v5 = vsel %vm602_vm5, %v595_v44, %v617_v2  ;;  %v621_v6 = vmul.f32 1.050701, %v618_v3 }
 0x24a   :  { %v623_v7 = vmul.f32 1.050701, %v620_v5  ;;  %v619_v8 = vsel %vm601_vm6, %v556_v47, %v616_v4 }
 0x24b   :  { %v622_v9 = vmul.f32 1.050701, %v619_v8  ;;  %v624_v12 = vpack.c.bf16 %v621_v6, %v621_v6 }
 0x24c   :  { %v626_v10 = vpack.c.bf16 %v623_v7, %v623_v7 }
 0x24d   :  { %v625_v11 = vpack.c.bf16 %v622_v9, %v622_v9 }
 0x24e   :  { %1111 = vmatmul.mubr.bf16.vlgmr.msra.gmra.mrb[8].mxu0 %v626_v10 }
 0x24f   :  { %858 = vmatprep.mubr.bf16.mxu1 %v625_v11 }
 0x250   :  { %859 = vmatmul.mubr.bf16.vlgmr.msra.gmra.mrb[8].mxu1 %v624_v12 }
 0x321   :  { %v900_v13 = vpop.f32.mrb[8].mxu0 }
 0x322   :  { %v1112_v14 = vpop.f32.mrb[9].mxu0 }
 0x323   :  { %v1049_v15 = vpop.f32.mrb[8].mxu1  ;;  %v903_v16 = vpop.f32.mrb[10].mxu0 }
 0x324   :  { %v1050_v18 = vpop.f32.mrb[9].mxu1  ;;  %v1113_v19 = vpop.f32.mrb[11].mxu0 }
 0x325   :  { %v1051_v20 = vadd.f32 %v1050_v18, %v1049_v15  ;;  %v1052_v21 = vpop.f32.mrb[10].mxu1 }
 0x326   :  { %v1053_v22 = vpop.f32.mrb[11].mxu1 }
 0x327   :  { %v861_v23 = vadd.f32 %v1051_v20, %v973_v17 }
 0x329   :  { %v901_v24 = vadd.f32 %v900_v13, %v861_v23 }
 0x32b   :  { %906 = vst [vmem:[#allocation10] sm:$0xff] %v901_v24 }
 0x32c   :  { %1308 = shalt.err (!%p1305_p8)
}
 0x32d   :  { %s1309_s10 = scalar_lea.hbm %s1486_s7, 128 }
 0x32e   :  { %p1310_p9 = scmp.ne.s32.totalorder %s1486_s7, %s1309_s10  ;;  %p1313_p10 = scmp.lt.u32.totalorder %s1309_s10, %s1486_s7 }
 0x330   :  { %p1315_p11 = pnand %p1313_p10, %p1310_p9 }
 0x332   :  { %1318 = shalt.err (!%p1315_p11)
}
 0x333   :  { %916 = dma.vmem_to_hbm [thread:$0]  %s914_s30, 128, %s1486_s7, [#allocation4]  }
 0x334   :  { %1325 = dma.done.wait [#allocation4], 128  }
 0x335   :  { %1326 = vsyncadd [#allocation4], 4294967168 }
 0x336   :  { %920 = vsyncpa [#allocation3], 1 }
 0x337   :  { %921 = vsyncpa [#allocation6], 1 }
 0x338   :  { %922 = vsyncpa [#allocation9], 1 }
 0x339   :  { %923 = vsyncpa [#allocation4], 1 }

</bundles_post_ra>
